<compile_context>
chip_gen: v7x
topology: tpu7x:2x2x1
jax: 0.10.0
libtpu: 0.0.40
codegen_flags: <defaults>
</compile_context>

<pallas_src>
import functools

import jax
import jax.numpy as jnp
from jax.experimental import pallas as pl
from jax.experimental.pallas import tpu as pltpu

EPS = 1e-5   # nn.BatchNorm2d default eps
LANE = 128   # TPU lane width


def _round_up(x, m):
    return (x + m - 1) // m * m


def _conv_stats_kernel(x_ref, w_ref, stats_ref, *, tile_m, m_total):
    """Phase 1: conv tile matmul -> per-tile partial BN stats (no conv store).

    x_ref:     (tile_m, K_pad)  bf16 im2col patch tile
    w_ref:     (K_pad, tn)      bf16 weights (resident along the m axis)
    stats_ref: (1, 2, tn)       f32 per-tile [sum, sum_sq]
    """
    y = jnp.dot(x_ref[...], w_ref[...], preferred_element_type=jnp.float32)

    # Mask rows that are only M-padding so they don't bias the statistics.
    row0 = pl.program_id(0) * tile_m
    rid = row0 + jax.lax.broadcasted_iota(jnp.int32, (tile_m, 1), 0)
    y_m = jnp.where(rid < m_total, y, 0.0)

    s = jnp.sum(y_m, axis=0, keepdims=True)           # (1, tn)  XLU reduce
    sq = jnp.sum(y_m * y_m, axis=0, keepdims=True)    # (1, tn)
    stats_ref[0:1, 0:1, :] = s[None]
    stats_ref[0:1, 1:2, :] = sq[None]


def _conv_bn_relu_kernel(x_ref, w_ref, scale_ref, shift_ref, o_ref):
    """Phase 2: recompute the conv tile, apply folded BN FMA + ReLU (all f32)."""
    y = jnp.dot(x_ref[...], w_ref[...], preferred_element_type=jnp.float32)
    z = y * scale_ref[...] + shift_ref[...]
    o_ref[...] = jnp.maximum(z, 0.0).astype(o_ref.dtype)


def _pick_tile_m(m_total, k_pad, tn, requested):
    """tile_m: multiple of 256, >=2 tiles when possible, VMEM-bounded (v7x)."""
    tile_m = max(256, _round_up(requested, 256))
    if m_total <= tile_m:
        tile_m = min(tile_m, max(256, _round_up(-(-m_total // 2), 256)))

    def vmem(tm):  # double-buffered X + W + out f32 tile
        return 2 * (tm * k_pad * 2 + k_pad * tn * 2 + tm * tn * 4)

    while tile_m > 256 and vmem(tile_m) > 40 * 2**20:
        tile_m //= 2
    return max(tile_m, 256)


def conv_bn_relu(x_nchw, weight, bias, gamma, beta, padding=1, tile_m=1024):
    """weight: (Cout, Cin, KH, KW) PyTorch OIHW layout.

    tile_m: requested rows per grid step; auto-shrunk for small M / VMEM.
    Guidance: 1024-2048 on v5e/v6e, 512-1024 on v7x (64 MiB VMEM).
    """
    del bias  # Conv bias cancels exactly under training-mode BatchNorm.
    N, Cin, H, W = x_nchw.shape
    Cout, _, KH, KW = weight.shape
    Ho = H + 2 * padding - KH + 1       # stride=1, dilation=1
    Wo = W + 2 * padding - KW + 1
    M = N * Ho * Wo
    K = KH * KW * Cin

    C_pad = _round_up(Cout, LANE)
    tn = 256 if C_pad % 256 == 0 else LANE        # 256-wide MXU on v6e/v7x
    n_c = C_pad // tn
    K_pad = _round_up(K, LANE)                    # lane-dense, MXU-aligned K
    tile_m = _pick_tile_m(M, K_pad, tn, tile_m)
    M_pad = _round_up(M, tile_m)
    n_m = M_pad // tile_m

    # ---- JAX glue: NCHW -> NHWC, zero pad, im2col, bf16 for the MXU ----
    x = jnp.transpose(x_nchw, (0, 2, 3, 1))
    xp = jnp.pad(x, ((0, 0), (padding, padding), (padding, padding), (0, 0)))
    patches = [xp[:, kh:kh + Ho, kw:kw + Wo, :]
               for kh in range(KH) for kw in range(KW)]
    X = jnp.concatenate(patches, axis=-1).reshape(M, K)
    X = jnp.pad(X, ((0, M_pad - M), (0, K_pad - K))).astype(jnp.bfloat16)
    # (kh, kw, cin) row order matches the patch concat order above.
    Wm = jnp.transpose(weight, (2, 3, 1, 0)).reshape(K, Cout)
    Wm = jnp.pad(Wm, ((0, K_pad - K), (0, C_pad - Cout))).astype(jnp.bfloat16)

    # Explicit VMEM limits (defaults: ~16 MiB v5e / ~32 MiB v6e,v7x scoped).
    vmem_p1 = 2 * (tile_m * K_pad * 2 + K_pad * tn * 2 + 2 * tn * 4)
    vmem_p2 = 2 * (tile_m * K_pad * 2 + K_pad * tn * 2 + 2 * tn * 4
                   + tile_m * tn * 4)

    def _limit(b):
        return int(min(64 * 2**20, max(32 * 2**20, 1.5 * b)))

    # ---- Phase 1: tiled conv matmul reduced to per-tile partial stats ----
    kernel1 = functools.partial(_conv_stats_kernel, tile_m=tile_m, m_total=M)
    part_stats = pl.pallas_call(
        kernel1,
        grid=(n_m, n_c),
        in_specs=[
            pl.BlockSpec((tile_m, K_pad), lambda i, j: (i, 0)),
            pl.BlockSpec((K_pad, tn), lambda i, j: (0, j)),
        ],
        out_specs=pl.BlockSpec((1, 2, tn), lambda i, j: (i, 0, j)),
        out_shape=jax.ShapeDtypeStruct((n_m, 2, C_pad), jnp.float32),
        compiler_params=pltpu.CompilerParams(
            dimension_semantics=("parallel", "parallel"),
            vmem_limit_bytes=_limit(vmem_p1)),
    )(X, Wm)

    # ---- Tiny per-channel glue: fold BN into a single (scale, shift) ----
    sums = jnp.sum(part_stats[:, 0, :], axis=0)            # (C_pad,)
    sqs = jnp.sum(part_stats[:, 1, :], axis=0)             # (C_pad,)
    mean = sums / M
    # E[x^2]-E[x]^2 in f32; acceptable here (no conv bias -> modest |mean|).
    var = jnp.maximum(sqs / M - mean * mean, 0.0)           # biased variance
    gamma_p = jnp.pad(gamma.astype(jnp.float32), (0, C_pad - Cout))
    beta_p = jnp.pad(beta.astype(jnp.float32), (0, C_pad - Cout))
    scale_v = gamma_p * jax.lax.rsqrt(var + EPS)
    shift_v = beta_p - mean * scale_v
    scale = scale_v.reshape(1, C_pad)
    shift = shift_v.reshape(1, C_pad)

    # ---- Phase 2: recompute conv tile + folded scale/shift + ReLU ----
    out = pl.pallas_call(
        _conv_bn_relu_kernel,
        grid=(n_m, n_c),
        in_specs=[
            pl.BlockSpec((tile_m, K_pad), lambda i, j: (i, 0)),
            pl.BlockSpec((K_pad, tn), lambda i, j: (0, j)),
            pl.BlockSpec((1, tn), lambda i, j: (0, j)),
            pl.BlockSpec((1, tn), lambda i, j: (0, j)),
        ],
        out_specs=pl.BlockSpec((tile_m, tn), lambda i, j: (i, j)),
        out_shape=jax.ShapeDtypeStruct((M_pad, C_pad), jnp.float32),
        compiler_params=pltpu.CompilerParams(
            dimension_semantics=("parallel", "parallel"),
            vmem_limit_bytes=_limit(vmem_p2)),
    )(X, Wm, scale, shift)

    y = out[:M, :Cout].reshape(N, Ho, Wo, Cout)
    return jnp.transpose(y, (0, 3, 1, 2))  # back to NCHW


def reference(x, weight, bias, gamma, beta, padding=1, input_dtype=jnp.float32):
    """Pure-JAX reference of the PyTorch module (training-mode BN)."""
    xc = x.astype(input_dtype).astype(jnp.float32)
    wc = weight.astype(input_dtype).astype(jnp.float32)
    conv = jax.lax.conv_general_dilated(
        xc, wc, window_strides=(1, 1),
        padding=((padding, padding), (padding, padding)),
        dimension_numbers=("NCHW", "OIHW", "NCHW"),
        precision=jax.lax.Precision.HIGHEST,
    ) + bias.reshape(1, -1, 1, 1)
    mean = conv.mean(axis=(0, 2, 3), keepdims=True)
    var = ((conv - mean) ** 2).mean(axis=(0, 2, 3), keepdims=True)
    y = (conv - mean) / jnp.sqrt(var + EPS)
    y = y * gamma.reshape(1, -1, 1, 1) + beta.reshape(1, -1, 1, 1)
    return jnp.maximum(y, 0.0)


if __name__ == "__main__":
    # ConvBNReLU(in_channels=4, out_channels=8, kernel_size=3, padding=1)
    N, Cin, H, W = 2, 4, 16, 16
    Cout, KH, KW, pad = 8, 3, 3, 1

    key = jax.random.PRNGKey(0)
    k_x, k_w, k_b, k_g, k_beta = jax.random.split(key, 5)

    x = jax.random.normal(k_x, (N, Cin, H, W), dtype=jnp.float32)
    weight = 0.1 * jax.random.normal(k_w, (Cout, Cin, KH, KW), dtype=jnp.float32)
    bias = 0.1 * jax.random.normal(k_b, (Cout,), dtype=jnp.float32)
    gamma = 1.0 + 0.1 * jax.random.normal(k_g, (Cout,), dtype=jnp.float32)
    beta = 0.1 * jax.random.normal(k_beta, (Cout,), dtype=jnp.float32)

    fwd = jax.jit(functools.partial(conv_bn_relu, padding=pad))
    out = jax.block_until_ready(fwd(x, weight, bias, gamma, beta))
    assert out.shape == (N, Cout, H, W)

    # Tight check: reference fed the same bf16-rounded conv operands the MXU
    # sees -> validates tiling / two-phase BN / masking / epilogue folding.
    ref_bf = reference(x, weight, bias, gamma, beta, padding=pad,
                       input_dtype=jnp.bfloat16)
    assert jnp.allclose(out, ref_bf, atol=5e-4, rtol=5e-4), \
        "mismatch vs bf16-input reference"

    # Loose check: full-f32 module semantics (error bounded by the intentional
    # bf16 cast of the MXU operands).
    ref_f32 = reference(x, weight, bias, gamma, beta, padding=pad)
    assert jnp.allclose(out, ref_f32, atol=5e-2, rtol=5e-2), \
        "mismatch vs f32 reference"

    print("KERNEL_OK")
</pallas_src>

<mosaic_0001>
module attributes {stable_mosaic.version = 11 : i64} {
  func.func @_conv_stats_kernel(%arg0: i32, %arg1: i32, %arg2: memref<256x128xbf16, #tpu.memory_space<vmem>>, %arg3: memref<128x128xbf16, #tpu.memory_space<vmem>>, %arg4: memref<1x2x128xf32, #tpu.memory_space<vmem>>) attributes {dimension_semantics = [#tpu.dimension_semantics<parallel>, #tpu.dimension_semantics<parallel>], iteration_bounds = array<i64: 2, 1>, scalar_prefetch = 0 : i64, scratch_operands = 0 : i64, tpu.core_type = #tpu.core_type<tc>, window_params = [{transform_indices = @transform_0, window_bounds = array<i64: 256, 128>}, {transform_indices = @transform_1, window_bounds = array<i64: 128, 128>}, {transform_indices = @transform_2, window_bounds = array<i64: 1, 2, 128>}]} {
    %c0 = arith.constant 0 : index
    %c0_0 = arith.constant 0 : index
    %0 = vector.load %arg2[%c0, %c0_0] : memref<256x128xbf16, #tpu.memory_space<vmem>>, vector<256x128xbf16>
    %c0_1 = arith.constant 0 : index
    %c0_2 = arith.constant 0 : index
    %1 = vector.load %arg3[%c0_1, %c0_2] : memref<128x128xbf16, #tpu.memory_space<vmem>>, vector<128x128xbf16>
    %cst = arith.constant dense<0.000000e+00> : vector<256x128xf32>
    %2 = tpu.matmul %0, %1, %cst {dimension_numbers = #tpu.dot_dimension_numbers<[1], [0], [0], [1], [0, 0, 1, 1], [], []>} : vector<256x128xbf16>, vector<128x128xbf16>, vector<256x128xf32> -> vector<256x128xf32>
    %c256_i32 = arith.constant 256 : i32
    %3 = arith.muli %arg0, %c256_i32 : i32
    %4 = tpu.iota {dimensions = array<i32: 0>} : vector<256x1xi32>
    %5 = vector.broadcast %3 : i32 to vector<256x1xi32>
    %6 = arith.addi %5, %4 : vector<256x1xi32>
    %c512_i32 = arith.constant 512 : i32
    %7 = vector.broadcast %c512_i32 : i32 to vector<256x1xi32>
    %8 = arith.cmpi slt, %6, %7 : vector<256x1xi32>
    %cst_3 = arith.constant 0.000000e+00 : f32
    %9 = vector.shape_cast %8 : vector<256x1xi1> to vector<256x1xi1>
    %10 = vector.broadcast %9 : vector<256x1xi1> to vector<256x128xi1>
    %11 = vector.broadcast %cst_3 : f32 to vector<256x128xf32>
    %12 = arith.select %10, %2, %11 : vector<256x128xi1>, vector<256x128xf32>
    %cst_4 = arith.constant dense<0.000000e+00> : vector<128xf32>
    %13 = vector.multi_reduction <add>, %12, %cst_4 [0] : vector<256x128xf32> to vector<128xf32>
    %14 = vector.shape_cast %13 : vector<128xf32> to vector<1x128xf32>
    %15 = arith.mulf %12, %12 : vector<256x128xf32>
    %cst_5 = arith.constant dense<0.000000e+00> : vector<128xf32>
    %16 = vector.multi_reduction <add>, %15, %cst_5 [0] : vector<256x128xf32> to vector<128xf32>
    %17 = vector.shape_cast %16 : vector<128xf32> to vector<1x128xf32>
    %18 = vector.shape_cast %14 : vector<1x128xf32> to vector<1x1x128xf32>
    %c0_6 = arith.constant 0 : index
    %c0_7 = arith.constant 0 : index
    %c0_8 = arith.constant 0 : index
    %19 = vector.load %arg4[%c0_6, %c0_7, %c0_8] : memref<1x2x128xf32, #tpu.memory_space<vmem>>, vector<1x1x128xf32>
    tpu.vector_store %arg4[%c0_6, %c0_7, %c0_8], %18 {strides = array<i32>} : memref<1x2x128xf32, #tpu.memory_space<vmem>>, vector<1x1x128xf32>,
    %20 = vector.shape_cast %17 : vector<1x128xf32> to vector<1x1x128xf32>
    %c0_9 = arith.constant 0 : index
    %c1 = arith.constant 1 : index
    %c0_10 = arith.constant 0 : index
    %21 = vector.load %arg4[%c0_9, %c1, %c0_10] : memref<1x2x128xf32, #tpu.memory_space<vmem>>, vector<1x1x128xf32>
    tpu.vector_store %arg4[%c0_9, %c1, %c0_10], %20 {strides = array<i32>} : memref<1x2x128xf32, #tpu.memory_space<vmem>>, vector<1x1x128xf32>,
    return
  }
  func.func @transform_0(%arg0: i32, %arg1: i32) -> (i32, i32) {
    %c0_i32 = arith.constant 0 : i32
    %c0_i32_0 = arith.constant 0 : i32
    return %arg0, %c0_i32 : i32, i32
  }
  func.func @transform_1(%arg0: i32, %arg1: i32) -> (i32, i32) {
    %c0_i32 = arith.constant 0 : i32
    %c0_i32_0 = arith.constant 0 : i32
    return %c0_i32, %arg1 : i32, i32
  }
  func.func @transform_2(%arg0: i32, %arg1: i32) -> (i32, i32, i32) {
    %c0_i32 = arith.constant 0 : i32
    %c0_i32_0 = arith.constant 0 : i32
    return %arg0, %c0_i32, %arg1 : i32, i32, i32
  }
}

module attributes {stable_mosaic.version = 11 : i64} {
  func.func @_conv_bn_relu_kernel(%arg0: i32, %arg1: i32, %arg2: memref<256x128xbf16, #tpu.memory_space<vmem>>, %arg3: memref<128x128xbf16, #tpu.memory_space<vmem>>, %arg4: memref<1x128xf32, #tpu.memory_space<vmem>>, %arg5: memref<1x128xf32, #tpu.memory_space<vmem>>, %arg6: memref<256x128xf32, #tpu.memory_space<vmem>>) attributes {dimension_semantics = [#tpu.dimension_semantics<parallel>, #tpu.dimension_semantics<parallel>], iteration_bounds = array<i64: 2, 1>, scalar_prefetch = 0 : i64, scratch_operands = 0 : i64, tpu.core_type = #tpu.core_type<tc>, window_params = [{transform_indices = @transform_0, window_bounds = array<i64: 256, 128>}, {transform_indices = @transform_1, window_bounds = array<i64: 128, 128>}, {transform_indices = @transform_2, window_bounds = array<i64: 1, 128>}, {transform_indices = @transform_3, window_bounds = array<i64: 1, 128>}, {transform_indices = @transform_4, window_bounds = array<i64: 256, 128>}]} {
    %c0 = arith.constant 0 : index
    %c0_0 = arith.constant 0 : index
    %0 = vector.load %arg2[%c0, %c0_0] : memref<256x128xbf16, #tpu.memory_space<vmem>>, vector<256x128xbf16>
    %c0_1 = arith.constant 0 : index
    %c0_2 = arith.constant 0 : index
    %1 = vector.load %arg3[%c0_1, %c0_2] : memref<128x128xbf16, #tpu.memory_space<vmem>>, vector<128x128xbf16>
    %cst = arith.constant dense<0.000000e+00> : vector<256x128xf32>
    %2 = tpu.matmul %0, %1, %cst {dimension_numbers = #tpu.dot_dimension_numbers<[1], [0], [0], [1], [0, 0, 1, 1], [], []>} : vector<256x128xbf16>, vector<128x128xbf16>, vector<256x128xf32> -> vector<256x128xf32>
    %c0_3 = arith.constant 0 : index
    %c0_4 = arith.constant 0 : index
    %3 = vector.load %arg4[%c0_3, %c0_4] : memref<1x128xf32, #tpu.memory_space<vmem>>, vector<1x128xf32>
    %4 = vector.broadcast %3 : vector<1x128xf32> to vector<256x128xf32>
    %5 = arith.mulf %2, %4 : vector<256x128xf32>
    %c0_5 = arith.constant 0 : index
    %c0_6 = arith.constant 0 : index
    %6 = vector.load %arg5[%c0_5, %c0_6] : memref<1x128xf32, #tpu.memory_space<vmem>>, vector<1x128xf32>
    %7 = vector.broadcast %6 : vector<1x128xf32> to vector<256x128xf32>
    %8 = arith.addf %5, %7 : vector<256x128xf32>
    %cst_7 = arith.constant 0.000000e+00 : f32
    %9 = vector.broadcast %cst_7 : f32 to vector<256x128xf32>
    %10 = arith.maximumf %8, %9 : vector<256x128xf32>
    %c0_8 = arith.constant 0 : index
    %c0_9 = arith.constant 0 : index
    %11 = vector.load %arg6[%c0_8, %c0_9] : memref<256x128xf32, #tpu.memory_space<vmem>>, vector<256x128xf32>
    tpu.vector_store %arg6[%c0_8, %c0_9], %10 {strides = array<i32>} : memref<256x128xf32, #tpu.memory_space<vmem>>, vector<256x128xf32>,
    return
  }
  func.func @transform_0(%arg0: i32, %arg1: i32) -> (i32, i32) {
    %c0_i32 = arith.constant 0 : i32
    %c0_i32_0 = arith.constant 0 : i32
    return %arg0, %c0_i32 : i32, i32
  }
  func.func @transform_1(%arg0: i32, %arg1: i32) -> (i32, i32) {
    %c0_i32 = arith.constant 0 : i32
    %c0_i32_0 = arith.constant 0 : i32
    return %c0_i32, %arg1 : i32, i32
  }
  func.func @transform_2(%arg0: i32, %arg1: i32) -> (i32, i32) {
    %c0_i32 = arith.constant 0 : i32
    %c0_i32_0 = arith.constant 0 : i32
    return %c0_i32, %arg1 : i32, i32
  }
  func.func @transform_3(%arg0: i32, %arg1: i32) -> (i32, i32) {
    %c0_i32 = arith.constant 0 : i32
    %c0_i32_0 = arith.constant 0 : i32
    return %c0_i32, %arg1 : i32, i32
  }
  func.func @transform_4(%arg0: i32, %arg1: i32) -> (i32, i32) {
    %c0_i32 = arith.constant 0 : i32
    return %arg0, %arg1 : i32, i32
  }
}

</mosaic_0001>

<bundles_post_ra>
// kernel: conv_bn_relu.2
= control target key start
LH: loop header
LB: loop body
LE: loop exit
PB: predicated region body
PF: predicated region fallthrough
CT: control target
= control target key end

     0   :  { %s1136_s9 = smov 0   ;;  %s1138_s10 = smov 0   ;;  %s1342_s0 = inlined_call_operand.vmem [shape: bf16[512,128], index: 0, kind: input, shape index: {}]   ;;  %s1343_s1 = inlined_call_operand.vmem [shape: bf16[128,128], index: 1, kind: input, shape index: {}]   ;;  %s1344_s2 = inlined_call_operand.vmem [shape: f32[2,2,128], index: 2, kind: output, shape index: {}]  }
   0x1   :  { %s1140_s11 = smov 0  }
   0x2 LB: > { %s24_s12 = sadd.s32 1, %s1115_s10  ;;  %p930_p0 = scmp.ge.s32.totalorder %s1119_s11, 1  ;;  %s1119_s11 = sphi %s1140_s11, %s12_s11   ;;  %s1115_s10 = sphi %s1138_s10, %s1346_s10   ;;  %s1111_s9 = sphi %s1136_s9, %s1345_s9  }
   0x3   : > { %p26_p1 = scmp.ge.s32.totalorder %s24_s12, 2  ;;  %p136_p2 = scmp.lt.s32.totalorder %s1119_s11, 3 }
   0x5   : > { %s1348_s12 = smov (%p26_p1, %s24_s12), 0  ;;  %p137_p3 = pnand %p930_p0, %p136_p2 }
   0x6   : > { %v1073_v0 = vld [vmem:[%s1343_s1] sm:$0xff] (!%p137_p3)   ;;  %s931_s15 = sshll.u32 (!%p137_p3), %s1111_s9, 5  ;;  %v1074_v1 = vld [vmem:[%s1343_s1 + $0x8] sm:$0xff] (!%p137_p3)   ;;  %v1075_v2 = vld [vmem:[%s1343_s1 + $0x10] sm:$0xff] (!%p137_p3)   ;;  %v536_v24 = vlaneseq (!%p137_p3)  ;;  %s958_s6 = sshll.u32 (!%p137_p3), %s1111_s9, 8 }
   0x7   : > { %140 = sbr.rel (%p137_p3) target bundleno = 332 (0x14c), region = 28  ;;  %p165_p4 = scmp.lt.s32.totalorder (!%p137_p3), %s931_s15, 63  ;;  %985 = vmatprep.subr.bf16.mxu0 (!%p137_p3), %v1073_v0  ;;  %1033 = vmatprep.subr.bf16.mxu1 (!%p137_p3), %v1073_v0  ;;  %v1076_v3 = vld [vmem:[%s1343_s1 + $0x18] sm:$0xff] (!%p137_p3)   ;;  %v1077_v5 = vld [vmem:[%s1343_s1 + $0x20] sm:$0xff] (!%p137_p3)   ;;  %v1078_v6 = vld [vmem:[%s1343_s1 + $0x28] sm:$0xff] (!%p137_p3)   ;;  %v1205_v26 = vstv (!%p137_p3), %s958_s6 }
   0x8   : > { %986 = vmatpush3.bf16.msra.mxu0 (!%p137_p3), %v1073_v0  ;;  %1041 = vmatpush3.bf16.msra.mxu1 (!%p137_p3), %v1073_v0  ;;  %v1079_v8 = vld [vmem:[%s1343_s1 + $0x30] sm:$0xff] (!%p137_p3)   ;;  %v1080_v9 = vld [vmem:[%s1343_s1 + $0x38] sm:$0xff] (!%p137_p3)   ;;  %v1203_v25 = vshrl.u32 (!%p137_p3), %v536_v24, 7  ;;  %p174_p5 = scmp.lt.s32.totalorder (!%p137_p3), %s1111_s9, 1 }
   0x9   : > { %987 = vmatprep.subr.bf16.mxu0 (!%p137_p3), %v1074_v1  ;;  %1034 = vmatprep.subr.bf16.mxu1 (!%p137_p3), %v1074_v1 }
   0xa   : > { %v539_v27 = vadd.s32 (!%p137_p3), 16, %v1203_v25  ;;  %v538_v28 = vadd.s32 (!%p137_p3), 8, %v1203_v25  ;;  %v570_v29 = vadd.s32 (!%p137_p3), %v1205_v26, %v1203_v25  ;;  %v540_v30 = vadd.s32 (!%p137_p3), 24, %v1203_v25 }
   0xb   : > { %v541_v34 = vadd.s32 (!%p137_p3), 32, %v1203_v25  ;;  %v543_v36 = vadd.s32 (!%p137_p3), 48, %v1203_v25  ;;  %v542_v37 = vadd.s32 (!%p137_p3), 40, %v1203_v25  ;;  %v544_v43 = vadd.s32 (!%p137_p3), 56, %v1203_v25 }
   0xc   : > { %988 = vmatpush3.bf16.msra.mxu0 (!%p137_p3), %v1074_v1  ;;  %1042 = vmatpush3.bf16.msra.mxu1 (!%p137_p3), %v1074_v1  ;;  %v572_v31 = vadd.s32 (!%p137_p3), %v1205_v26, %v539_v27  ;;  %v571_v32 = vadd.s32 (!%p137_p3), %v1205_v26, %v538_v28  ;;  %vm602_vm0 = vcmp.lt.s32.totalorder (!%p137_p3), %v570_v29, 512  ;;  %v573_v33 = vadd.s32 (!%p137_p3), %v1205_v26, %v540_v30 }
   0xd   : > { %989 = vmatprep.subr.bf16.mxu0 (!%p137_p3), %v1075_v2  ;;  %1035 = vmatprep.subr.bf16.mxu1 (!%p137_p3), %v1075_v2  ;;  %v574_v46 = vadd.s32 (!%p137_p3), %v1205_v26, %v541_v34  ;;  %v576_v50 = vadd.s32 (!%p137_p3), %v1205_v26, %v543_v36  ;;  %v575_v51 = vadd.s32 (!%p137_p3), %v1205_v26, %v542_v37  ;;  %v545_v57 = vadd.s32 (!%p137_p3), 64, %v1203_v25 }
   0xe   : > { %s1350_s15 = smov (!%p165_p4, %s931_s15), 63  ;;  %vm604_vm1 = vcmp.lt.s32.totalorder %v572_v31, 512  ;;  %vm603_vm2 = vcmp.lt.s32.totalorder %v571_v32, 512  ;;  %vm605_vm3 = vcmp.lt.s32.totalorder %v573_v33, 512  ;;  %v577_v56 = vadd.s32 %v1205_v26, %v544_v43  ;;  %s1352_s9 = smov (!%p174_p5, %s1111_s9), 1 }
   0xf   : > { %s932_s20 = sshll.u32 %s1350_s15, 2  ;;  %vm606_vm4 = vcmp.lt.s32.totalorder %v574_v46, 512  ;;  %vm608_vm5 = vcmp.lt.s32.totalorder %v576_v50, 512  ;;  %vm607_vm6 = vcmp.lt.s32.totalorder %v575_v51, 512  ;;  %v547_v62 = vadd.s32 80, %v1203_v25  ;;  %s933_s7 = sshll.u32 %s1352_s9, 1 }
  0x10   : > { %s1169_s23 = scalar_lea.vmem %s1342_s0, %s932_s20  ;;  %990 = vmatpush3.bf16.msra.mxu0 %v1075_v2  ;;  %1043 = vmatpush3.bf16.msra.mxu1 %v1075_v2  ;;  %vm609_vm7 = vcmp.lt.s32.totalorder %v577_v56, 512  ;;  %v549_v30 = vadd.s32 96, %v1203_v25  ;;  %v551_v32 = vadd.s32 112, %v1203_v25  ;;  %v550_v33 = vadd.s32 104, %v1203_v25  ;;  %s180_s14 = scalar_lea.vmem %s1344_s2, %s933_s7 }
  0x11   : > { %v1081_v4 = vld [vmem:[%s1169_s23] sm:$0xff]   ;;  %991 = vmatprep.subr.bf16.mxu0 %v1076_v3  ;;  %1036 = vmatprep.subr.bf16.mxu1 %v1076_v3  ;;  %v1082_v10 = vld [vmem:[%s1169_s23 + $0x8] sm:$0xff]   ;;  %v1083_v12 = vld [vmem:[%s1169_s23 + $0x10] sm:$0xff]   ;;  %v553_v46 = vadd.s32 128, %v1203_v25 }
  0x12   : > { %1001 = vmatprep.mubr.bf16.mxu0 %v1081_v4  ;;  %v1089_v7 = vld [vmem:[%s1169_s23 + $0x40] sm:$0xff]   ;;  %v1090_v11 = vld [vmem:[%s1169_s23 + $0x48] sm:$0xff]   ;;  %v1091_v13 = vld [vmem:[%s1169_s23 + $0x50] sm:$0xff]   ;;  %v546_v4 = vadd.s32 72, %v1203_v25 }
  0x13   : > { %1017 = vmatprep.mubr.bf16.mxu1 %v1089_v7  ;;  %v1084_v14 = vld [vmem:[%s1169_s23 + $0x18] sm:$0xff]   ;;  %v1085_v16 = vld [vmem:[%s1169_s23 + $0x20] sm:$0xff]   ;;  %v1086_v18 = vld [vmem:[%s1169_s23 + $0x28] sm:$0xff]  }
  0x14   : > { %992 = vmatpush3.bf16.msra.mxu0 %v1076_v3  ;;  %1044 = vmatpush3.bf16.msra.mxu1 %v1076_v3  ;;  %v1092_v15 = vld [vmem:[%s1169_s23 + $0x58] sm:$0xff]   ;;  %v1093_v17 = vld [vmem:[%s1169_s23 + $0x60] sm:$0xff]   ;;  %v1094_v19 = vld [vmem:[%s1169_s23 + $0x68] sm:$0xff]  }
  0x15   : > { %993 = vmatprep.subr.bf16.mxu0 %v1077_v5  ;;  %1037 = vmatprep.subr.bf16.mxu1 %v1077_v5  ;;  %v1087_v20 = vld [vmem:[%s1169_s23 + $0x30] sm:$0xff]   ;;  %v1088_v22 = vld [vmem:[%s1169_s23 + $0x38] sm:$0xff]  }
  0x16   : > { %v1095_v21 = vld [vmem:[%s1169_s23 + $0x70] sm:$0xff]   ;;  %v1096_v23 = vld [vmem:[%s1169_s23 + $0x78] sm:$0xff]  }
  0x18   : > { %994 = vmatpush3.bf16.msra.mxu0 %v1077_v5  ;;  %1045 = vmatpush3.bf16.msra.mxu1 %v1077_v5 }
  0x19   : > { %995 = vmatprep.subr.bf16.mxu0 %v1078_v6  ;;  %1038 = vmatprep.subr.bf16.mxu1 %v1078_v6 }
  0x1c   : > { %996 = vmatpush3.bf16.msra.mxu0 %v1078_v6  ;;  %1046 = vmatpush3.bf16.msra.mxu1 %v1078_v6 }
  0x1d   : > { %997 = vmatprep.subr.bf16.mxu0 %v1079_v8  ;;  %1039 = vmatprep.subr.bf16.mxu1 %v1079_v8 }
  0x20   : > { %998 = vmatpush3.bf16.msra.mxu0 %v1079_v8  ;;  %1047 = vmatpush3.bf16.msra.mxu1 %v1079_v8  ;;  %v578_v8 = vadd.s32 %v1205_v26, %v545_v57  ;;  %v584_v57 = vadd.s32 %v1205_v26, %v551_v32 }
  0x21   : > { %999 = vmatprep.subr.bf16.mxu0 %v1080_v9  ;;  %1040 = vmatprep.subr.bf16.mxu1 %v1080_v9 }
  0x22   : > { %vm610_vm8 = vcmp.lt.s32.totalorder %v578_v8, 512  ;;  %vm616_vm13 = vcmp.lt.s32.totalorder %v584_v57, 512  ;;  %v555_v8 = vadd.s32 144, %v1203_v25 }
  0x24   : > { %1000 = vmatpush3.bf16.msra.mxu0 %v1080_v9  ;;  %1048 = vmatpush3.bf16.msra.mxu1 %v1080_v9  ;;  %v548_v9 = vadd.s32 88, %v1203_v25  ;;  %v588_v32 = vadd.s32 %v1205_v26, %v555_v8 }
  0x26   : > { %v581_v24 = vadd.s32 %v1205_v26, %v548_v9 }
  0x27   : > { %1002 = vmatmul.mubr.bf16.vlgmr.msra.gmra.mrb[0].mxu0 %v1082_v10  ;;  %1018 = vmatmul.mubr.bf16.vlgmr.msra.gmra.mrb[0].mxu1 %v1090_v11 }
  0x28   : > { %1005 = vmatprep.mubr.bf16.mxu0 %v1083_v12  ;;  %1021 = vmatprep.mubr.bf16.mxu1 %v1091_v13  ;;  %vm613_vm11 = vcmp.lt.s32.totalorder %v581_v24, 512 }
  0x2f   : > { %1006 = vmatmul.mubr.bf16.gmra.mrb[4].mxu0 %v1084_v14  ;;  %1022 = vmatmul.mubr.bf16.gmra.mrb[4].mxu1 %v1092_v15 }
  0x30   : > { %1009 = vmatprep.mubr.bf16.mxu0 %v1085_v16  ;;  %1025 = vmatprep.mubr.bf16.mxu1 %v1093_v17 }
  0x37   : > { %1010 = vmatmul.mubr.bf16.gmra.mrb[8].mxu0 %v1086_v18  ;;  %1026 = vmatmul.mubr.bf16.gmra.mrb[8].mxu1 %v1094_v19  ;;  %v580_v18 = vadd.s32 %v1205_v26, %v547_v62 }
  0x38   : > { %1013 = vmatprep.mubr.bf16.mxu0 %v1087_v20  ;;  %1029 = vmatprep.mubr.bf16.mxu1 %v1095_v21 }
  0x39   : > { %vm612_vm9 = vcmp.lt.s32.totalorder %v580_v18, 512 }
  0x3f   : > { %1014 = vmatmul.mubr.bf16.gmra.mrb[12].mxu0 %v1088_v22  ;;  %1030 = vmatmul.mubr.bf16.gmra.mrb[12].mxu1 %v1096_v23  ;;  %v579_v22 = vadd.s32 %v1205_v26, %v546_v4 }
  0x41   : > { %vm611_vm10 = vcmp.lt.s32.totalorder %v579_v22, 512 }
  0xfa   : > { %v1003_v35 = vpop.f32.mrb[0].mxu0  ;;  %v1218_v38 = vpop.f32.mrb[0].mxu1 }
  0xfb   : > { %v408_v39 = vpop.f32.mrb[1].mxu0  ;;  %v1220_v40 = vpop.f32.mrb[1].mxu1  ;;  %v700_v48 = vsel %vm604_vm1, %v1003_v35, 0.0 }
  0xfc   : > { %v698_v41 = vsel %vm602_vm0, %v408_v39, 0.0  ;;  %v1004_v42 = vpop.f32.mrb[2].mxu0  ;;  %v1223_v44 = vpop.f32.mrb[2].mxu1  ;;  %v769_v58 = vmul.f32 %v700_v48, %v700_v48 }
  0xfd   : > { %v411_v45 = vpop.f32.mrb[3].mxu0  ;;  %v1226_v47 = vpop.f32.mrb[3].mxu1  ;;  %v767_v52 = vmul.f32 %v698_v41, %v698_v41  ;;  %v701_v55 = vsel %vm605_vm3, %v1004_v42, 0.0 }
  0xfe   : > { %v699_v49 = vsel %vm603_vm2, %v411_v45, 0.0  ;;  %v770_v0 = vmul.f32 %v701_v55, %v701_v55  ;;  %v552_v45 = vadd.s32 120, %v1203_v25  ;;  %vm620_vm2 = vcmp.lt.s32.totalorder %v588_v32, 512 }
  0xff   : > { %v730_v53 = vadd.f32 %v699_v49, %v698_v41  ;;  %v768_v54 = vmul.f32 %v699_v49, %v699_v49 }
 0x101   : > { %v731_v59 = vadd.f32 %v730_v53, %v700_v48  ;;  %v799_v60 = vadd.f32 %v768_v54, %v767_v52  ;;  %v582_v53 = vadd.s32 %v1205_v26, %v549_v30 }
 0x102   : > { %v1007_v61 = vpop.f32.mrb[4].mxu0  ;;  %v1233_v63 = vpop.f32.mrb[4].mxu1 }
 0x103   : > { %v800_v1 = vadd.f32 %v799_v60, %v769_v58  ;;  %v424_v2 = vpop.f32.mrb[5].mxu0  ;;  %v732_v3 = vadd.f32 %v731_v59, %v701_v55  ;;  %v1236_v5 = vpop.f32.mrb[5].mxu1  ;;  %v704_v16 = vsel %vm608_vm5, %v1007_v61, 0.0  ;;  %v583_v58 = vadd.s32 %v1205_v26, %v550_v33 }
 0x104   : > { %v702_v6 = vsel %vm606_vm4, %v424_v2, 0.0  ;;  %v1008_v7 = vpop.f32.mrb[6].mxu0  ;;  %v1240_v10 = vpop.f32.mrb[6].mxu1  ;;  %v773_v27 = vmul.f32 %v704_v16, %v704_v16  ;;  %v554_v2 = vadd.s32 136, %v1203_v25  ;;  %vm614_vm12 = vcmp.lt.s32.totalorder %v582_v53, 512 }
 0x105   : > { %v733_v11 = vadd.f32 %v732_v3, %v702_v6  ;;  %v771_v12 = vmul.f32 %v702_v6, %v702_v6  ;;  %v801_v13 = vadd.f32 %v800_v1, %v770_v0  ;;  %v427_v14 = vpop.f32.mrb[7].mxu0  ;;  %v1242_v15 = vpop.f32.mrb[7].mxu1  ;;  %v705_v23 = vsel %vm609_vm7, %v1008_v7, 0.0 }
 0x106   : > { %v703_v17 = vsel %vm607_vm6, %v427_v14, 0.0  ;;  %v774_v35 = vmul.f32 %v705_v23, %v705_v23  ;;  %v585_v0 = vadd.s32 %v1205_v26, %v552_v45  ;;  %v586_v1 = vadd.s32 %v1205_v26, %v553_v46 }
 0x107   : > { %v802_v19 = vadd.f32 %v801_v13, %v771_v12  ;;  %v734_v20 = vadd.f32 %v733_v11, %v703_v17  ;;  %v772_v21 = vmul.f32 %v703_v17, %v703_v17  ;;  %vm615_vm14 = vcmp.lt.s32.totalorder %v583_v58, 512 }
 0x108   : > { %vm617_vm15 = vcmp.lt.s32.totalorder %v585_v0, 512  ;;  %vm618_vm0 = vcmp.lt.s32.totalorder %v586_v1, 512 }
 0x109   : > { %v735_v28 = vadd.f32 %v734_v20, %v704_v16  ;;  %v803_v29 = vadd.f32 %v802_v19, %v772_v21  ;;  %v556_v16 = vadd.s32 152, %v1203_v25  ;;  %v587_v20 = vadd.s32 %v1205_v26, %v554_v2 }
 0x10a   : > { %v1011_v31 = vpop.f32.mrb[8].mxu0  ;;  %v1252_v34 = vpop.f32.mrb[8].mxu1 }
 0x10b   : > { %v804_v36 = vadd.f32 %v803_v29, %v773_v27  ;;  %v440_v37 = vpop.f32.mrb[9].mxu0  ;;  %v736_v39 = vadd.f32 %v735_v28, %v705_v23  ;;  %v1254_v41 = vpop.f32.mrb[9].mxu1  ;;  %v708_v55 = vsel %vm612_vm9, %v1011_v31, 0.0  ;;  %v557_v28 = vadd.s32 160, %v1203_v25 }
 0x10c   : > { %v706_v42 = vsel %vm610_vm8, %v440_v37, 0.0  ;;  %v1012_v43 = vpop.f32.mrb[10].mxu0  ;;  %v1259_v48 = vpop.f32.mrb[10].mxu1  ;;  %v777_v3 = vmul.f32 %v708_v55, %v708_v55  ;;  %v589_v37 = vadd.s32 %v1205_v26, %v556_v16  ;;  %vm619_vm1 = vcmp.lt.s32.totalorder %v587_v20, 512 }
 0x10d   : > { %v737_v49 = vadd.f32 %v736_v39, %v706_v42  ;;  %v775_v50 = vmul.f32 %v706_v42, %v706_v42  ;;  %v805_v51 = vadd.f32 %v804_v36, %v774_v35  ;;  %v443_v52 = vpop.f32.mrb[11].mxu0  ;;  %v1262_v54 = vpop.f32.mrb[11].mxu1  ;;  %v709_v62 = vsel %vm613_vm11, %v1012_v43, 0.0 }
 0x10e   : > { %v707_v56 = vsel %vm611_vm10, %v443_v52, 0.0  ;;  %v778_v11 = vmul.f32 %v709_v62, %v709_v62  ;;  %v714_v42 = vsel %vm618_vm0, %v1220_v40, 0.0  ;;  %v558_v43 = vadd.s32 168, %v1203_v25 }
 0x10f   : > { %v806_v59 = vadd.f32 %v805_v51, %v775_v50  ;;  %v738_v60 = vadd.f32 %v737_v49, %v707_v56  ;;  %v776_v61 = vmul.f32 %v707_v56, %v707_v56  ;;  %v590_v50 = vadd.s32 %v1205_v26, %v557_v28 }
 0x110   : > { %v559_v51 = vadd.s32 176, %v1203_v25  ;;  %v560_v52 = vadd.s32 184, %v1203_v25  ;;  %v783_v57 = vmul.f32 %v714_v42, %v714_v42  ;;  %vm621_vm3 = vcmp.lt.s32.totalorder %v589_v37, 512 }
 0x111   : > { %v739_v4 = vadd.f32 %v738_v60, %v708_v55  ;;  %v807_v6 = vadd.f32 %v806_v59, %v776_v61  ;;  %v715_v40 = vsel %vm619_vm1, %v1226_v47, 0.0  ;;  %v591_v58 = vadd.s32 %v1205_v26, %v558_v43 }
 0x112   : > { %v1015_v7 = vpop.f32.mrb[12].mxu0  ;;  %v1272_v9 = vpop.f32.mrb[12].mxu1  ;;  %vm622_vm4 = vcmp.lt.s32.totalorder %v590_v50, 512  ;;  %v561_v61 = vadd.s32 192, %v1203_v25  ;;  %v592_v0 = vadd.s32 %v1205_v26, %v559_v51 }
 0x113   : > { %v808_v12 = vadd.f32 %v807_v6, %v777_v3  ;;  %v456_v13 = vpop.f32.mrb[13].mxu0  ;;  %v740_v14 = vadd.f32 %v739_v4, %v709_v62  ;;  %v1275_v17 = vpop.f32.mrb[13].mxu1  ;;  %v712_v30 = vsel %vm616_vm13, %v1015_v7, 0.0  ;;  %v716_v62 = vsel %vm620_vm2, %v1218_v38, 0.0 }
 0x114   : > { %v710_v18 = vsel %vm614_vm12, %v456_v13, 0.0  ;;  %v1016_v19 = vpop.f32.mrb[14].mxu0  ;;  %v1278_v21 = vpop.f32.mrb[14].mxu1  ;;  %v781_v45 = vmul.f32 %v712_v30, %v712_v30  ;;  %v784_v3 = vmul.f32 %v715_v40, %v715_v40  ;;  %v593_v4 = vadd.s32 %v1205_v26, %v560_v52 }
 0x115   : > { %v741_v22 = vadd.f32 %v740_v14, %v710_v18  ;;  %v779_v23 = vmul.f32 %v710_v18, %v710_v18  ;;  %v809_v24 = vadd.f32 %v808_v12, %v778_v11  ;;  %v459_v27 = vpop.f32.mrb[15].mxu0  ;;  %v1281_v29 = vpop.f32.mrb[15].mxu1  ;;  %v713_v39 = vsel %vm617_vm15, %v1016_v19, 0.0 }
 0x116   : > { %v711_v31 = vsel %vm615_vm14, %v459_v27, 0.0  ;;  %v782_v53 = vmul.f32 %v713_v39, %v713_v39  ;;  %v717_v6 = vsel %vm621_vm3, %v1223_v44, 0.0  ;;  %v718_v47 = vsel %vm622_vm4, %v1236_v5, 0.0 }
 0x117   : > { %v810_v33 = vadd.f32 %v809_v24, %v779_v23  ;;  %v742_v35 = vadd.f32 %v741_v22, %v711_v31  ;;  %v780_v36 = vmul.f32 %v711_v31, %v711_v31  ;;  %vm623_vm5 = vcmp.lt.s32.totalorder %v591_v58, 512 }
 0x118   : > { %v562_v7 = vadd.s32 200, %v1203_v25  ;;  %v785_v8 = vmul.f32 %v716_v62, %v716_v62  ;;  %v594_v13 = vadd.s32 %v1205_v26, %v561_v61  ;;  %vm624_vm6 = vcmp.lt.s32.totalorder %v592_v0, 512 }
 0x119   : > { %v743_v46 = vadd.f32 %v742_v35, %v712_v30  ;;  %v811_v49 = vadd.f32 %v810_v33, %v780_v36  ;;  %v563_v38 = vadd.s32 208, %v1203_v25  ;;  %v564_v14 = vadd.s32 216, %v1203_v25 }
 0x11a   : > { %v786_v16 = vmul.f32 %v717_v6, %v717_v6  ;;  %v787_v20 = vmul.f32 %v718_v47, %v718_v47  ;;  %vm625_vm7 = vcmp.lt.s32.totalorder %v593_v4, 512  ;;  %v719_v44 = vsel %vm623_vm5, %v1242_v15, 0.0 }
 0x11b   : > { %v812_v55 = vadd.f32 %v811_v49, %v781_v45  ;;  %v744_v56 = vadd.f32 %v743_v46, %v713_v39  ;;  %v595_v5 = vadd.s32 %v1205_v26, %v562_v7  ;;  %vm626_vm8 = vcmp.lt.s32.totalorder %v594_v13, 512 }
 0x11c   : > { %v565_v24 = vadd.s32 224, %v1203_v25  ;;  %v720_v27 = vsel %vm624_vm6, %v1233_v63, 0.0  ;;  %v596_v28 = vadd.s32 %v1205_v26, %v563_v38  ;;  %v788_v32 = vmul.f32 %v719_v44, %v719_v44 }
 0x11d   : > { %v745_v59 = vadd.f32 %v744_v56, %v714_v42  ;;  %v813_v60 = vadd.f32 %v812_v55, %v782_v53  ;;  %v597_v33 = vadd.s32 %v1205_v26, %v564_v14  ;;  %v721_v35 = vsel %vm625_vm7, %v1240_v10, 0.0 }
 0x11e   : > { %v722_v15 = vsel %vm626_vm8, %v1254_v41, 0.0  ;;  %vm627_vm9 = vcmp.lt.s32.totalorder %v595_v5, 512  ;;  %v566_v36 = vadd.s32 232, %v1203_v25  ;;  %v789_v37 = vmul.f32 %v720_v27, %v720_v27 }
 0x11f   : > { %v814_v1 = vadd.f32 %v813_v60, %v783_v57  ;;  %v746_v2 = vadd.f32 %v745_v59, %v715_v40  ;;  %v598_v43 = vadd.s32 %v1205_v26, %v565_v24  ;;  %vm628_vm10 = vcmp.lt.s32.totalorder %v596_v28, 512 }
 0x120   : > { %v567_v63 = vadd.s32 240, %v1203_v25  ;;  %v790_v45 = vmul.f32 %v721_v35, %v721_v35  ;;  %v791_v50 = vmul.f32 %v722_v15, %v722_v15  ;;  %vm629_vm11 = vcmp.lt.s32.totalorder %v597_v33, 512 }
 0x121   : > { %v747_v11 = vadd.f32 %v746_v2, %v716_v62  ;;  %v815_v12 = vadd.f32 %v814_v1, %v784_v3  ;;  %v723_v10 = vsel %vm627_vm9, %v1262_v54, 0.0  ;;  %v568_v41 = vadd.s32 248, %v1203_v25 }
 0x122   : > { %vm630_vm12 = vcmp.lt.s32.totalorder %v598_v43, 512  ;;  %v599_v53 = vadd.s32 %v1205_v26, %v566_v36  ;;  %v724_v55 = vsel %vm628_vm10, %v1252_v34, 0.0  ;;  %v600_v56 = vadd.s32 %v1205_v26, %v567_v63 }
 0x123   : > { %v816_v18 = vadd.f32 %v815_v12, %v785_v8  ;;  %v748_v19 = vadd.f32 %v747_v11, %v717_v6  ;;  %v792_v58 = vmul.f32 %v723_v10, %v723_v10  ;;  %v725_v59 = vsel %vm629_vm11, %v1259_v48, 0.0 }
 0x124   : > { %v726_v60 = vsel %vm630_vm12, %v1275_v17, 0.0  ;;  %v601_v54 = vadd.s32 %v1205_v26, %v568_v41  ;;  %v793_v61 = vmul.f32 %v724_v55, %v724_v55  ;;  %vm631_vm13 = vcmp.lt.s32.totalorder %v599_v53, 512 }
 0x125   : > { %v749_v22 = vadd.f32 %v748_v19, %v718_v47  ;;  %v817_v23 = vadd.f32 %v816_v18, %v786_v16  ;;  %vm632_vm14 = vcmp.lt.s32.totalorder %v600_v56, 512  ;;  %v794_v0 = vmul.f32 %v725_v59, %v725_v59 }
 0x126   : > { %v795_v2 = vmul.f32 %v726_v60, %v726_v60  ;;  %v727_v3 = vsel %vm631_vm13, %v1281_v29, 0.0  ;;  %vm633_vm15 = vcmp.lt.s32.totalorder %v601_v54, 512  ;;  %v728_v48 = vsel %vm632_vm14, %v1272_v9, 0.0 }
 0x127   : > { %v818_v30 = vadd.f32 %v817_v23, %v787_v20  ;;  %v750_v31 = vadd.f32 %v749_v22, %v719_v44  ;;  %v796_v47 = vmul.f32 %v727_v3, %v727_v3  ;;  %v729_v7 = vsel %vm633_vm15, %v1278_v21, 0.0 }
 0x128   : > { %v797_v8 = vmul.f32 %v728_v48, %v728_v48  ;;  %v798_v13 = vmul.f32 %v729_v7, %v729_v7 }
 0x129   : > { %v751_v39 = vadd.f32 %v750_v31, %v720_v27  ;;  %v819_v42 = vadd.f32 %v818_v30, %v788_v32 }
 0x12b   : > { %v820_v46 = vadd.f32 %v819_v42, %v789_v37  ;;  %v752_v49 = vadd.f32 %v751_v39, %v721_v35 }
 0x12d   : > { %v753_v51 = vadd.f32 %v752_v49, %v722_v15  ;;  %v821_v52 = vadd.f32 %v820_v46, %v790_v45 }
 0x12f   : > { %v822_v57 = vadd.f32 %v821_v52, %v791_v50  ;;  %v754_v40 = vadd.f32 %v753_v51, %v723_v10 }
 0x131   : > { %v755_v25 = vadd.f32 %v754_v40, %v724_v55  ;;  %v823_v62 = vadd.f32 %v822_v57, %v792_v58 }
 0x133   : > { %v824_v1 = vadd.f32 %v823_v62, %v793_v61  ;;  %v756_v34 = vadd.f32 %v755_v25, %v725_v59 }
 0x135   : > { %v757_v4 = vadd.f32 %v756_v34, %v726_v60  ;;  %v825_v6 = vadd.f32 %v824_v1, %v794_v0 }
 0x137   : > { %v826_v17 = vadd.f32 %v825_v6, %v795_v2  ;;  %v758_v26 = vadd.f32 %v757_v4, %v727_v3 }
 0x139   : > { %v759_v11 = vadd.f32 %v758_v26, %v728_v48  ;;  %v827_v12 = vadd.f32 %v826_v17, %v796_v47 }
 0x13b   : > { %v760_v38 = vadd.f32 %v759_v11, %v729_v7  ;;  %v828_v14 = vadd.f32 %v827_v12, %v797_v8 }
 0x13d   : > { %v761_v16 = vrot.slane %v760_v38, 4  ;;  %v829_v29 = vadd.f32 %v828_v14, %v798_v13 }
 0x13f   : > { %v762_v18 = vadd.f32 %v761_v16, %v760_v38  ;;  %v830_v19 = vrot.slane %v829_v29, 4 }
 0x141   : > { %v763_v20 = vrot.slane %v762_v18, 2  ;;  %v831_v44 = vadd.f32 %v830_v19, %v829_v29 }
 0x143   : > { %v764_v9 = vadd.f32 %v763_v20, %v762_v18  ;;  %v832_v5 = vrot.slane %v831_v44, 2 }
 0x145   : > { %v765_v22 = vrot.slane %v764_v9, 1  ;;  %v833_v23 = vadd.f32 %v832_v5, %v831_v44 }
 0x147   : > { %v766_v21 = vadd.f32 %v765_v22, %v764_v9  ;;  %v834_v24 = vrot.slane %v833_v23, 1 }
 0x149   : > { %v835_v27 = vadd.f32 %v834_v24, %v833_v23  ;;  %836 = vst [vmem:[%s180_s14] sm:$0x1] %v766_v21 }
 0x14b   : > { %837 = vst [vmem:[%s180_s14 + $0x1] sm:$0x1] %v835_v27 }
 0x14c PF: > { %s12_s11 = sadd.s32 1, %s1119_s11   ;;  %s1345_s9 = smov %s1115_s10 }
 0x14d   : > { %p9_p6 = scmp.ge.s32.totalorder %s12_s11, 4   ;;  %s1346_s10 = smov %s1348_s12 }
 0x14f   :  { %11 = sbr.rel (!%p9_p6) target bundleno = 2 (0x2), region = 61 }

// kernel: conv_bn_relu.3
= control target key start
LH: loop header
LB: loop body
LE: loop exit
PB: predicated region body
PF: predicated region fallthrough
CT: control target
= control target key end

     0   :  { %s1101_s15 = smov 0   ;;  %s1103_s16 = smov 0   ;;  %s1288_s0 = inlined_call_operand.vmem [shape: bf16[512,128], index: 0, kind: input, shape index: {}]   ;;  %s1289_s1 = inlined_call_operand.vmem [shape: bf16[128,128], index: 1, kind: input, shape index: {}]   ;;  %s1290_s2 = inlined_call_operand.vmem [shape: f32[1,128], index: 2, kind: input, shape index: {}]   ;;  %s1291_s3 = inlined_call_operand.vmem [shape: f32[1,128], index: 3, kind: input, shape index: {}]   ;;  %s1292_s4 = inlined_call_operand.vmem [shape: f32[512,128], index: 4, kind: output, shape index: {}]  }
   0x1   :  { %s1105_s17 = smov 0  }
   0x2 LB: > { %s26_s18 = sadd.s32 1, %s1070_s16  ;;  %p883_p0 = scmp.ge.s32.totalorder %s1074_s17, 1  ;;  %s1074_s17 = sphi %s1105_s17, %s14_s17   ;;  %s1070_s16 = sphi %s1103_s16, %s1294_s16   ;;  %s1066_s15 = sphi %s1101_s15, %s1293_s15  }
   0x3   : > { %p28_p1 = scmp.ge.s32.totalorder %s26_s18, 2  ;;  %p202_p2 = scmp.lt.s32.totalorder %s1074_s17, 3 }
   0x5   : > { %s1296_s18 = smov (%p28_p1, %s26_s18), 0  ;;  %p203_p3 = pnand %p883_p0, %p202_p2 }
   0x6   : > { %v1028_v0 = vld [vmem:[%s1289_s1] sm:$0xff] (!%p203_p3)   ;;  %s884_s21 = sshll.u32 (!%p203_p3), %s1066_s15, 5  ;;  %v1029_v1 = vld [vmem:[%s1289_s1 + $0x8] sm:$0xff] (!%p203_p3)   ;;  %v1030_v2 = vld [vmem:[%s1289_s1 + $0x10] sm:$0xff] (!%p203_p3)  }
   0x7   : > { %206 = sbr.rel (%p203_p3) target bundleno = 285 (0x11d), region = 36  ;;  %p242_p4 = scmp.lt.s32.totalorder (!%p203_p3), %s884_s21, 63  ;;  %940 = vmatprep.subr.bf16.mxu0 (!%p203_p3), %v1028_v0  ;;  %988 = vmatprep.subr.bf16.mxu1 (!%p203_p3), %v1028_v0  ;;  %v1031_v3 = vld [vmem:[%s1289_s1 + $0x18] sm:$0xff] (!%p203_p3)   ;;  %v1032_v6 = vld [vmem:[%s1289_s1 + $0x20] sm:$0xff] (!%p203_p3)   ;;  %v1033_v7 = vld [vmem:[%s1289_s1 + $0x28] sm:$0xff] (!%p203_p3)  }
   0x8   : > { %941 = vmatpush3.bf16.msra.mxu0 (!%p203_p3), %v1028_v0  ;;  %996 = vmatpush3.bf16.msra.mxu1 (!%p203_p3), %v1028_v0  ;;  %v1034_v8 = vld [vmem:[%s1289_s1 + $0x30] sm:$0xff] (!%p203_p3)   ;;  %v1035_v9 = vld [vmem:[%s1289_s1 + $0x38] sm:$0xff] (!%p203_p3)   ;;  %v1170_v24 = vld [vmem:[%s1290_s2] ss:$0 sm:$0xff] (!%p203_p3) }
   0x9   : > { %942 = vmatprep.subr.bf16.mxu0 (!%p203_p3), %v1029_v1  ;;  %989 = vmatprep.subr.bf16.mxu1 (!%p203_p3), %v1029_v1  ;;  %v1175_v26 = vld [vmem:[%s1291_s3] ss:$0 sm:$0xff] (!%p203_p3) }
   0xc   : > { %943 = vmatpush3.bf16.msra.mxu0 (!%p203_p3), %v1029_v1  ;;  %997 = vmatpush3.bf16.msra.mxu1 (!%p203_p3), %v1029_v1 }
   0xd   : > { %944 = vmatprep.subr.bf16.mxu0 (!%p203_p3), %v1030_v2  ;;  %990 = vmatprep.subr.bf16.mxu1 (!%p203_p3), %v1030_v2 }
   0xe   : > { %s1298_s21 = smov (!%p242_p4, %s884_s21), 63 }
   0xf   : > { %s885_s26 = sshll.u32 %s1298_s21, 2  ;;  %s887_s22 = sshll.u32 %s1298_s21, 3 }
  0x10   : > { %s1134_s29 = scalar_lea.vmem %s1288_s0, %s885_s26  ;;  %945 = vmatpush3.bf16.msra.mxu0 %v1030_v2  ;;  %998 = vmatpush3.bf16.msra.mxu1 %v1030_v2  ;;  %s1189_s24 = scalar_lea.vmem %s1292_s4, %s887_s22 }
  0x11   : > { %v1036_v4 = vld [vmem:[%s1134_s29] sm:$0xff]   ;;  %946 = vmatprep.subr.bf16.mxu0 %v1031_v3  ;;  %991 = vmatprep.subr.bf16.mxu1 %v1031_v3  ;;  %v1038_v10 = vld [vmem:[%s1134_s29 + $0x8] sm:$0xff]   ;;  %v1040_v12 = vld [vmem:[%s1134_s29 + $0x10] sm:$0xff]  }
  0x12   : > { %v1037_v5 = vld [vmem:[%s1134_s29 + $0x40] sm:$0xff]   ;;  %956 = vmatprep.mubr.bf16.mxu0 %v1036_v4  ;;  %v1039_v11 = vld [vmem:[%s1134_s29 + $0x48] sm:$0xff]   ;;  %v1041_v13 = vld [vmem:[%s1134_s29 + $0x50] sm:$0xff]  }
  0x13   : > { %972 = vmatprep.mubr.bf16.mxu1 %v1037_v5  ;;  %v1042_v14 = vld [vmem:[%s1134_s29 + $0x18] sm:$0xff]   ;;  %v1044_v16 = vld [vmem:[%s1134_s29 + $0x20] sm:$0xff]   ;;  %v1046_v18 = vld [vmem:[%s1134_s29 + $0x28] sm:$0xff]  }
  0x14   : > { %947 = vmatpush3.bf16.msra.mxu0 %v1031_v3  ;;  %999 = vmatpush3.bf16.msra.mxu1 %v1031_v3  ;;  %v1043_v15 = vld [vmem:[%s1134_s29 + $0x58] sm:$0xff]   ;;  %v1045_v17 = vld [vmem:[%s1134_s29 + $0x60] sm:$0xff]   ;;  %v1047_v19 = vld [vmem:[%s1134_s29 + $0x68] sm:$0xff]  }
  0x15   : > { %948 = vmatprep.subr.bf16.mxu0 %v1032_v6  ;;  %992 = vmatprep.subr.bf16.mxu1 %v1032_v6  ;;  %v1048_v20 = vld [vmem:[%s1134_s29 + $0x30] sm:$0xff]   ;;  %v1050_v22 = vld [vmem:[%s1134_s29 + $0x38] sm:$0xff]  }
  0x16   : > { %v1049_v21 = vld [vmem:[%s1134_s29 + $0x70] sm:$0xff]   ;;  %v1051_v23 = vld [vmem:[%s1134_s29 + $0x78] sm:$0xff]  }
  0x18   : > { %949 = vmatpush3.bf16.msra.mxu0 %v1032_v6  ;;  %1000 = vmatpush3.bf16.msra.mxu1 %v1032_v6 }
  0x19   : > { %950 = vmatprep.subr.bf16.mxu0 %v1033_v7  ;;  %993 = vmatprep.subr.bf16.mxu1 %v1033_v7 }
  0x1c   : > { %951 = vmatpush3.bf16.msra.mxu0 %v1033_v7  ;;  %1001 = vmatpush3.bf16.msra.mxu1 %v1033_v7 }
  0x1d   : > { %952 = vmatprep.subr.bf16.mxu0 %v1034_v8  ;;  %994 = vmatprep.subr.bf16.mxu1 %v1034_v8 }
  0x20   : > { %953 = vmatpush3.bf16.msra.mxu0 %v1034_v8  ;;  %1002 = vmatpush3.bf16.msra.mxu1 %v1034_v8 }
  0x21   : > { %954 = vmatprep.subr.bf16.mxu0 %v1035_v9  ;;  %995 = vmatprep.subr.bf16.mxu1 %v1035_v9 }
  0x24   : > { %955 = vmatpush3.bf16.msra.mxu0 %v1035_v9  ;;  %1003 = vmatpush3.bf16.msra.mxu1 %v1035_v9 }
  0x27   : > { %957 = vmatmul.mubr.bf16.vlgmr.msra.gmra.mrb[0].mxu0 %v1038_v10  ;;  %973 = vmatmul.mubr.bf16.vlgmr.msra.gmra.mrb[0].mxu1 %v1039_v11 }
  0x28   : > { %960 = vmatprep.mubr.bf16.mxu0 %v1040_v12  ;;  %976 = vmatprep.mubr.bf16.mxu1 %v1041_v13 }
  0x2f   : > { %961 = vmatmul.mubr.bf16.gmra.mrb[4].mxu0 %v1042_v14  ;;  %977 = vmatmul.mubr.bf16.gmra.mrb[4].mxu1 %v1043_v15 }
  0x30   : > { %964 = vmatprep.mubr.bf16.mxu0 %v1044_v16  ;;  %980 = vmatprep.mubr.bf16.mxu1 %v1045_v17 }
  0x37   : > { %965 = vmatmul.mubr.bf16.gmra.mrb[8].mxu0 %v1046_v18  ;;  %981 = vmatmul.mubr.bf16.gmra.mrb[8].mxu1 %v1047_v19 }
  0x38   : > { %968 = vmatprep.mubr.bf16.mxu0 %v1048_v20  ;;  %984 = vmatprep.mubr.bf16.mxu1 %v1049_v21 }
  0x3f   : > { %969 = vmatmul.mubr.bf16.gmra.mrb[12].mxu0 %v1050_v22  ;;  %985 = vmatmul.mubr.bf16.gmra.mrb[12].mxu1 %v1051_v23 }
  0xfa   : > { %v958_v25 = vpop.f32.mrb[0].mxu0  ;;  %v974_v27 = vpop.f32.mrb[0].mxu1 }
  0xfb   : > { %v629_v28 = vmul.f32 %v958_v25, %v1170_v24  ;;  %v645_v29 = vmul.f32 %v974_v27, %v1170_v24  ;;  %v493_v30 = vpop.f32.mrb[1].mxu0  ;;  %v557_v31 = vpop.f32.mrb[1].mxu1 }
  0xfc   : > { %v627_v32 = vmul.f32 %v1170_v24, %v493_v30  ;;  %v643_v33 = vmul.f32 %v1170_v24, %v557_v31  ;;  %v959_v34 = vpop.f32.mrb[2].mxu0  ;;  %v975_v35 = vpop.f32.mrb[2].mxu1 }
  0xfd   : > { %v668_v36 = vadd.f32 %v1175_v26, %v629_v28  ;;  %v684_v37 = vadd.f32 %v1175_v26, %v645_v29  ;;  %v630_v38 = vmul.f32 %v959_v34, %v1170_v24  ;;  %v646_v39 = vmul.f32 %v975_v35, %v1170_v24  ;;  %v496_v40 = vpop.f32.mrb[3].mxu0  ;;  %v560_v41 = vpop.f32.mrb[3].mxu1 }
  0xfe   : > { %v666_v42 = vadd.f32 %v1175_v26, %v627_v32  ;;  %v682_v43 = vadd.f32 %v1175_v26, %v643_v33  ;;  %v628_v44 = vmul.f32 %v1170_v24, %v496_v40  ;;  %v644_v45 = vmul.f32 %v1170_v24, %v560_v41 }
  0xff   : > { %v700_v46 = vmax.f32 %v668_v36, 0.0  ;;  %v716_v47 = vmax.f32 %v684_v37, 0.0  ;;  %v669_v48 = vadd.f32 %v1175_v26, %v630_v38  ;;  %v685_v49 = vadd.f32 %v1175_v26, %v646_v39 }
 0x100   : > { %v698_v50 = vmax.f32 %v666_v42, 0.0  ;;  %v714_v51 = vmax.f32 %v682_v43, 0.0  ;;  %v667_v52 = vadd.f32 %v1175_v26, %v628_v44  ;;  %v683_v53 = vadd.f32 %v1175_v26, %v644_v45 }
 0x101   : > { %732 = vst [vmem:[%s1189_s24 + $0x10] sm:$0xff] %v700_v46  ;;  %748 = vst [vmem:[%s1189_s24 + $0x90] sm:$0xff] %v716_v47  ;;  %v701_v54 = vmax.f32 %v669_v48, 0.0  ;;  %v717_v55 = vmax.f32 %v685_v49, 0.0 }
 0x102   : > { %730 = vst [vmem:[%s1189_s24] sm:$0xff] %v698_v50  ;;  %746 = vst [vmem:[%s1189_s24 + $0x80] sm:$0xff] %v714_v51  ;;  %v699_v56 = vmax.f32 %v667_v52, 0.0  ;;  %v715_v57 = vmax.f32 %v683_v53, 0.0  ;;  %v962_v58 = vpop.f32.mrb[4].mxu0  ;;  %v978_v59 = vpop.f32.mrb[4].mxu1 }
 0x103   : > { %733 = vst [vmem:[%s1189_s24 + $0x18] sm:$0xff] %v701_v54  ;;  %749 = vst [vmem:[%s1189_s24 + $0x98] sm:$0xff] %v717_v55  ;;  %v633_v60 = vmul.f32 %v962_v58, %v1170_v24  ;;  %v649_v61 = vmul.f32 %v978_v59, %v1170_v24  ;;  %v509_v62 = vpop.f32.mrb[5].mxu0  ;;  %v573_v63 = vpop.f32.mrb[5].mxu1 }
 0x104   : > { %731 = vst [vmem:[%s1189_s24 + $0x8] sm:$0xff] %v699_v56  ;;  %747 = vst [vmem:[%s1189_s24 + $0x88] sm:$0xff] %v715_v57  ;;  %v631_v0 = vmul.f32 %v1170_v24, %v509_v62  ;;  %v647_v1 = vmul.f32 %v1170_v24, %v573_v63  ;;  %v963_v2 = vpop.f32.mrb[6].mxu0  ;;  %v979_v3 = vpop.f32.mrb[6].mxu1 }
 0x105   : > { %v672_v4 = vadd.f32 %v1175_v26, %v633_v60  ;;  %v688_v5 = vadd.f32 %v1175_v26, %v649_v61  ;;  %v634_v6 = vmul.f32 %v963_v2, %v1170_v24  ;;  %v650_v7 = vmul.f32 %v979_v3, %v1170_v24  ;;  %v512_v8 = vpop.f32.mrb[7].mxu0  ;;  %v576_v9 = vpop.f32.mrb[7].mxu1 }
 0x106   : > { %v670_v10 = vadd.f32 %v1175_v26, %v631_v0  ;;  %v686_v11 = vadd.f32 %v1175_v26, %v647_v1  ;;  %v632_v12 = vmul.f32 %v1170_v24, %v512_v8  ;;  %v648_v13 = vmul.f32 %v1170_v24, %v576_v9 }
 0x107   : > { %v704_v14 = vmax.f32 %v672_v4, 0.0  ;;  %v720_v15 = vmax.f32 %v688_v5, 0.0  ;;  %v673_v16 = vadd.f32 %v1175_v26, %v634_v6  ;;  %v689_v17 = vadd.f32 %v1175_v26, %v650_v7 }
 0x108   : > { %v702_v18 = vmax.f32 %v670_v10, 0.0  ;;  %v718_v19 = vmax.f32 %v686_v11, 0.0  ;;  %v671_v20 = vadd.f32 %v1175_v26, %v632_v12  ;;  %v687_v21 = vadd.f32 %v1175_v26, %v648_v13 }
 0x109   : > { %736 = vst [vmem:[%s1189_s24 + $0x30] sm:$0xff] %v704_v14  ;;  %752 = vst [vmem:[%s1189_s24 + $0xb0] sm:$0xff] %v720_v15  ;;  %v705_v22 = vmax.f32 %v673_v16, 0.0  ;;  %v721_v23 = vmax.f32 %v689_v17, 0.0 }
 0x10a   : > { %734 = vst [vmem:[%s1189_s24 + $0x20] sm:$0xff] %v702_v18  ;;  %750 = vst [vmem:[%s1189_s24 + $0xa0] sm:$0xff] %v718_v19  ;;  %v703_v25 = vmax.f32 %v671_v20, 0.0  ;;  %v719_v27 = vmax.f32 %v687_v21, 0.0  ;;  %v966_v28 = vpop.f32.mrb[8].mxu0  ;;  %v982_v29 = vpop.f32.mrb[8].mxu1 }
 0x10b   : > { %737 = vst [vmem:[%s1189_s24 + $0x38] sm:$0xff] %v705_v22  ;;  %753 = vst [vmem:[%s1189_s24 + $0xb8] sm:$0xff] %v721_v23  ;;  %v637_v30 = vmul.f32 %v966_v28, %v1170_v24  ;;  %v653_v31 = vmul.f32 %v982_v29, %v1170_v24  ;;  %v525_v32 = vpop.f32.mrb[9].mxu0  ;;  %v589_v33 = vpop.f32.mrb[9].mxu1 }
 0x10c   : > { %735 = vst [vmem:[%s1189_s24 + $0x28] sm:$0xff] %v703_v25  ;;  %751 = vst [vmem:[%s1189_s24 + $0xa8] sm:$0xff] %v719_v27  ;;  %v635_v34 = vmul.f32 %v1170_v24, %v525_v32  ;;  %v651_v35 = vmul.f32 %v1170_v24, %v589_v33  ;;  %v967_v36 = vpop.f32.mrb[10].mxu0  ;;  %v983_v37 = vpop.f32.mrb[10].mxu1 }
 0x10d   : > { %v676_v38 = vadd.f32 %v1175_v26, %v637_v30  ;;  %v692_v39 = vadd.f32 %v1175_v26, %v653_v31  ;;  %v638_v40 = vmul.f32 %v967_v36, %v1170_v24  ;;  %v654_v41 = vmul.f32 %v983_v37, %v1170_v24  ;;  %v528_v42 = vpop.f32.mrb[11].mxu0  ;;  %v592_v43 = vpop.f32.mrb[11].mxu1 }
 0x10e   : > { %v674_v44 = vadd.f32 %v1175_v26, %v635_v34  ;;  %v690_v45 = vadd.f32 %v1175_v26, %v651_v35  ;;  %v636_v46 = vmul.f32 %v1170_v24, %v528_v42  ;;  %v652_v47 = vmul.f32 %v1170_v24, %v592_v43 }
 0x10f   : > { %v708_v48 = vmax.f32 %v676_v38, 0.0  ;;  %v724_v49 = vmax.f32 %v692_v39, 0.0  ;;  %v677_v50 = vadd.f32 %v1175_v26, %v638_v40  ;;  %v693_v51 = vadd.f32 %v1175_v26, %v654_v41 }
 0x110   : > { %v706_v52 = vmax.f32 %v674_v44, 0.0  ;;  %v722_v53 = vmax.f32 %v690_v45, 0.0  ;;  %v675_v54 = vadd.f32 %v1175_v26, %v636_v46  ;;  %v691_v55 = vadd.f32 %v1175_v26, %v652_v47 }
 0x111   : > { %740 = vst [vmem:[%s1189_s24 + $0x50] sm:$0xff] %v708_v48  ;;  %756 = vst [vmem:[%s1189_s24 + $0xd0] sm:$0xff] %v724_v49  ;;  %v709_v56 = vmax.f32 %v677_v50, 0.0  ;;  %v725_v57 = vmax.f32 %v693_v51, 0.0 }
 0x112   : > { %738 = vst [vmem:[%s1189_s24 + $0x40] sm:$0xff] %v706_v52  ;;  %754 = vst [vmem:[%s1189_s24 + $0xc0] sm:$0xff] %v722_v53  ;;  %v707_v58 = vmax.f32 %v675_v54, 0.0  ;;  %v723_v59 = vmax.f32 %v691_v55, 0.0  ;;  %v970_v60 = vpop.f32.mrb[12].mxu0  ;;  %v986_v61 = vpop.f32.mrb[12].mxu1 }
 0x113   : > { %741 = vst [vmem:[%s1189_s24 + $0x58] sm:$0xff] %v709_v56  ;;  %757 = vst [vmem:[%s1189_s24 + $0xd8] sm:$0xff] %v725_v57  ;;  %v641_v62 = vmul.f32 %v970_v60, %v1170_v24  ;;  %v657_v63 = vmul.f32 %v986_v61, %v1170_v24  ;;  %v541_v0 = vpop.f32.mrb[13].mxu0  ;;  %v605_v1 = vpop.f32.mrb[13].mxu1 }
 0x114   : > { %739 = vst [vmem:[%s1189_s24 + $0x48] sm:$0xff] %v707_v58  ;;  %755 = vst [vmem:[%s1189_s24 + $0xc8] sm:$0xff] %v723_v59  ;;  %v639_v2 = vmul.f32 %v1170_v24, %v541_v0  ;;  %v655_v3 = vmul.f32 %v1170_v24, %v605_v1  ;;  %v971_v4 = vpop.f32.mrb[14].mxu0  ;;  %v987_v5 = vpop.f32.mrb[14].mxu1 }
 0x115   : > { %v680_v6 = vadd.f32 %v1175_v26, %v641_v62  ;;  %v696_v7 = vadd.f32 %v1175_v26, %v657_v63  ;;  %v642_v8 = vmul.f32 %v971_v4, %v1170_v24  ;;  %v658_v9 = vmul.f32 %v987_v5, %v1170_v24  ;;  %v544_v10 = vpop.f32.mrb[15].mxu0  ;;  %v608_v11 = vpop.f32.mrb[15].mxu1 }
 0x116   : > { %v678_v12 = vadd.f32 %v1175_v26, %v639_v2  ;;  %v694_v13 = vadd.f32 %v1175_v26, %v655_v3  ;;  %v640_v14 = vmul.f32 %v1170_v24, %v544_v10  ;;  %v656_v15 = vmul.f32 %v1170_v24, %v608_v11 }
 0x117   : > { %v712_v16 = vmax.f32 %v680_v6, 0.0  ;;  %v728_v17 = vmax.f32 %v696_v7, 0.0  ;;  %v681_v18 = vadd.f32 %v1175_v26, %v642_v8  ;;  %v697_v19 = vadd.f32 %v1175_v26, %v658_v9 }
 0x118   : > { %v710_v20 = vmax.f32 %v678_v12, 0.0  ;;  %v726_v21 = vmax.f32 %v694_v13, 0.0  ;;  %v679_v22 = vadd.f32 %v1175_v26, %v640_v14  ;;  %v695_v23 = vadd.f32 %v1175_v26, %v656_v15 }
 0x119   : > { %744 = vst [vmem:[%s1189_s24 + $0x70] sm:$0xff] %v712_v16  ;;  %760 = vst [vmem:[%s1189_s24 + $0xf0] sm:$0xff] %v728_v17  ;;  %v713_v25 = vmax.f32 %v681_v18, 0.0  ;;  %v729_v24 = vmax.f32 %v697_v19, 0.0 }
 0x11a   : > { %742 = vst [vmem:[%s1189_s24 + $0x60] sm:$0xff] %v710_v20  ;;  %758 = vst [vmem:[%s1189_s24 + $0xe0] sm:$0xff] %v726_v21  ;;  %v711_v27 = vmax.f32 %v679_v22, 0.0  ;;  %v727_v28 = vmax.f32 %v695_v23, 0.0 }
 0x11b   : > { %745 = vst [vmem:[%s1189_s24 + $0x78] sm:$0xff] %v713_v25  ;;  %761 = vst [vmem:[%s1189_s24 + $0xf8] sm:$0xff] %v729_v24 }
 0x11c   : > { %743 = vst [vmem:[%s1189_s24 + $0x68] sm:$0xff] %v711_v27  ;;  %759 = vst [vmem:[%s1189_s24 + $0xe8] sm:$0xff] %v727_v28 }
 0x11d PF: > { %s14_s17 = sadd.s32 1, %s1074_s17   ;;  %s1293_s15 = smov %s1070_s16 }
 0x11e   : > { %p11_p5 = scmp.ge.s32.totalorder %s14_s17, 4   ;;  %s1294_s16 = smov %s1296_s18 }
 0x120   :  { %13 = sbr.rel (!%p11_p5) target bundleno = 2 (0x2), region = 75 }

</bundles_post_ra>
